<compile_context>
chip_gen: v6e
topology: v6e:2x2x1
jax: 0.10.0
libtpu: 0.0.40
codegen_flags: <defaults>
</compile_context>

<pallas_src>
import functools

import jax
import jax.numpy as jnp
from jax import lax
from jax.experimental import pallas as pl
from jax.experimental.pallas import tpu as pltpu

BETA1, BETA2, ADAM_EPS = 0.9, 0.999, 1e-8   # torch.optim.Adam defaults
COS_EPS = 1e-8                              # torch.cosine_similarity eps


def _fused_clip_opt_kernel(sc_ref, tn_ref, x0_ref, tgt_ref, w_ref,
                           x_ref, losses_ref, m_ref, v_ref):
    """Single invocation: runs the full optimization loop with VMEM-resident state."""
    n_iters = sc_ref.shape[1]

    # One-time init (the output VMEM buffer is not preloaded even with aliasing,
    # so the init-image copy stays; it is a single tiny VMEM->VMEM copy).
    x_ref[...] = x0_ref[...]                     # init_images.clone()
    m_ref[...] = jnp.zeros_like(m_ref)           # Adam exp_avg
    v_ref[...] = jnp.zeros_like(v_ref)           # Adam exp_avg_sq
    losses_ref[...] = jnp.zeros_like(losses_ref)

    tgt = tgt_ref[...]                           # (1, F) f32, loop-invariant (1 vreg)
    t_nrm = tn_ref[0, 0]                         # scalar ||target|| (host-precomputed)
    # Hoisted out of the loop (JAX does not CSE broadcast/iota inside loops).
    lane_ids = lax.broadcasted_iota(jnp.int32, losses_ref.shape, 1)

    def body(i, carry):
        x = x_ref[...]                                            # (1, D) f32

        # --- clip_model.encode_image(images): one MXU matmul, K = D ------------
        f = jnp.dot(x.astype(jnp.bfloat16), w_ref[...],
                    preferred_element_type=jnp.float32)           # (1, F) f32

        # --- loss = -cosine_similarity(image_features, target_features).mean() -
        f_sq = jnp.sum(f * f, axis=-1, keepdims=True)             # (1, 1)
        f_nrm = jnp.sqrt(f_sq)
        inv_denom = 1.0 / jnp.maximum(f_nrm * t_nrm, COS_EPS)     # torch-style clamp
        cos = jnp.sum(f * tgt, axis=-1, keepdims=True) * inv_denom
        # Record this iteration's loss (batch of 1 -> mean == -cos).
        losses_ref[...] = jnp.where(lane_ids == i, -cos, losses_ref[...])

        # --- loss.backward(): analytic grad through cosine + linear encoder ----
        inv_fsq = 1.0 / jnp.maximum(f_sq, COS_EPS)
        g_f = -(tgt * inv_denom - cos * f * inv_fsq)              # (1, F) f32
        # g_x = g_f @ W^T : one MXU issue contracting F, result already (1, D).
        g_x = lax.dot_general(g_f.astype(jnp.bfloat16), w_ref[...],
                              (((1,), (1,)), ((), ())),
                              preferred_element_type=jnp.float32)  # (1, D) f32

        # --- optimizer.step(): Adam (torch defaults), then images.clamp_(0, 1) -
        a_t = sc_ref[0, i]    # lr / (1 - beta1**t)   (bias correction folded into lr)
        rc2 = sc_ref[1, i]    # 1  / (1 - beta2**t)
        m = BETA1 * m_ref[...] + (1.0 - BETA1) * g_x
        v = BETA2 * v_ref[...] + (1.0 - BETA2) * (g_x * g_x)
        denom = jnp.sqrt(v * rc2) + ADAM_EPS
        # approx reciprocal runs on the EUP slot; not bit-exact vs torch's divide.
        update = (a_t * m) * pl.reciprocal(denom, approx=True)
        x_ref[...] = jnp.clip(x - update, 0.0, 1.0)
        m_ref[...] = m
        v_ref[...] = v
        return carry

    lax.fori_loop(0, n_iters, body, 0)


@jax.jit
def _clip_optimize(scalars, t_nrm, x0, target_features, w2):
    n_iters = scalars.shape[1]
    D = x0.shape[1]
    n_pad = pl.cdiv(n_iters, 128) * 128          # lane-dense loss output

    smem = pl.BlockSpec(memory_space=pltpu.MemorySpace.SMEM)
    vmem = pl.BlockSpec(memory_space=pltpu.MemorySpace.VMEM)

    return pl.pallas_call(
        _fused_clip_opt_kernel,
        out_shape=(
            jax.ShapeDtypeStruct((1, D), jnp.float32),        # optimized image (flat)
            jax.ShapeDtypeStruct((1, n_pad), jnp.float32),    # per-iteration losses
        ),
        in_specs=[
            smem,   # (2, N) per-iteration Adam scalars
            smem,   # (1, 1) ||target||
            vmem,   # (1, D) init image (loaded once)
            vmem,   # (1, F) target features
            vmem,   # (D, F) bf16 encoder weight, VMEM-resident for the whole loop
        ],
        out_specs=(vmem, vmem),
        scratch_shapes=[
            pltpu.VMEM((1, D), jnp.float32),     # Adam m (never written to HBM)
            pltpu.VMEM((1, D), jnp.float32),     # Adam v
        ],
        # Donate the init-image HBM buffer to the image output.
        input_output_aliases={2: 0},
    )(scalars, t_nrm, x0, target_features, w2)


def init_siren_params(key, dim_in=2, dim_hidden=256, dim_out=3, num_layers=5):
    # Mirrors the SIREN created in __init__ (not used by forward()).
    params = []
    dims = [dim_in] + [dim_hidden] * (num_layers - 1) + [dim_out]
    for i, (d_in, d_out) in enumerate(zip(dims[:-1], dims[1:])):
        key, kw, kb = jax.random.split(key, 3)
        bound = (1.0 / d_in) if i == 0 else jnp.sqrt(6.0 / d_in) / 30.0
        params.append((
            jax.random.uniform(kw, (d_out, d_in), jnp.float32, -bound, bound),
            jax.random.uniform(kb, (d_out,), jnp.float32, -bound, bound),
        ))
    return params


def image_generator_forward(target_features, w_enc, image_shape=(1, 3, 16, 16),
                            num_iterations=20, lr=0.01):
    """Reproduces ImageGenerator.forward's optimization loop (scaled-down, fused)."""
    B, C, H, W = image_shape
    D = C * H * W
    assert B == 1 and D % 128 == 0, "toy layout assumes batch 1 and D % 128 == 0"
    F = w_enc.shape[1]

    # TODO(synk): get_init_images((224, 224)) is undefined in the reference;
    # deterministic uniform [0,1) init at the small shape, flat lane-dense (1, D).
    x0 = jax.random.uniform(jax.random.PRNGKey(0), (1, D), dtype=jnp.float32)

    # bf16 weights (f32 accumulation in-kernel), 2-D (D, F) so both matmuls are a
    # single MXU contraction with no in-kernel reshape.
    w2 = w_enc.astype(jnp.bfloat16)

    # Per-iteration Adam scalars, precomputed on the host, long axis last for SMEM.
    t = jnp.arange(1, num_iterations + 1, dtype=jnp.float32)
    scalars = jnp.stack([lr / (1.0 - BETA1 ** t), 1.0 / (1.0 - BETA2 ** t)],
                        axis=0).astype(jnp.float32)                  # (2, N)
    t_nrm = jnp.sqrt(jnp.sum(target_features.astype(jnp.float32) ** 2)).reshape(1, 1)

    x, losses = _clip_optimize(scalars, t_nrm, x0,
                               target_features.astype(jnp.float32), w2)
    return x.reshape(B, C, H, W), losses[0, :num_iterations]


if __name__ == "__main__":
    key = jax.random.PRNGKey(0)
    k_w, k_t, k_s = jax.random.split(key, 3)

    B, C, H, W = 1, 3, 16, 16          # small stand-in for (1, 3, 224, 224)
    D, F = C * H * W, 128              # flattened pixels -> feature dim

    # Synthetic deterministic "CLIP" image-encoder weight.
    w_enc = jax.random.normal(k_w, (D, F), jnp.float32) / jnp.sqrt(D)
    # TODO(synk): clip.tokenize + clip_model.encode_text have no Pallas equivalent;
    # use deterministic stand-in target features.
    target_features = jax.random.normal(k_t, (1, F), jnp.float32)

    # SIREN params from __init__ (unused by forward, kept for shape fidelity).
    _siren_params = init_siren_params(k_s)

    num_iterations = 20
    images, losses = image_generator_forward(target_features, w_enc,
                                             image_shape=(B, C, H, W),
                                             num_iterations=num_iterations, lr=0.01)
    jax.block_until_ready(images)
    jax.block_until_ready(losses)

    assert images.shape == (B, C, H, W)
    assert losses.shape == (num_iterations,)
    assert bool(jnp.all(images >= 0.0)) and bool(jnp.all(images <= 1.0))
    assert bool(jnp.isfinite(losses).all())
    print("KERNEL_OK")
</pallas_src>

<mosaic_0001>
module attributes {stable_mosaic.version = 11 : i64} {
  func.func @_fused_clip_opt_kernel(%arg0: memref<2x20xf32, #tpu.memory_space<smem>>, %arg1: memref<1x1xf32, #tpu.memory_space<smem>>, %arg2: memref<1x768xf32, #tpu.memory_space<vmem>>, %arg3: memref<1x128xf32, #tpu.memory_space<vmem>>, %arg4: memref<768x128xbf16, #tpu.memory_space<vmem>>, %arg5: memref<1x768xf32, #tpu.memory_space<vmem>>, %arg6: memref<1x128xf32, #tpu.memory_space<vmem>>, %arg7: memref<1x768xf32, #tpu.memory_space<vmem>>, %arg8: memref<1x768xf32, #tpu.memory_space<vmem>>) attributes {dimension_semantics = [], scalar_prefetch = 0 : i64, scratch_operands = 2 : i64, tpu.core_type = #tpu.core_type<tc>} {
    %c0 = arith.constant 0 : index
    %c0_0 = arith.constant 0 : index
    %0 = vector.load %arg2[%c0, %c0_0] : memref<1x768xf32, #tpu.memory_space<vmem>>, vector<1x768xf32>
    %c0_1 = arith.constant 0 : index
    %c0_2 = arith.constant 0 : index
    %1 = vector.load %arg5[%c0_1, %c0_2] : memref<1x768xf32, #tpu.memory_space<vmem>>, vector<1x768xf32>
    tpu.vector_store %arg5[%c0_1, %c0_2], %0 {strides = array<i32>} : memref<1x768xf32, #tpu.memory_space<vmem>>, vector<1x768xf32>,
    %cst = arith.constant 0.000000e+00 : f32
    %2 = vector.broadcast %cst : f32 to vector<1x768xf32>
    %c0_3 = arith.constant 0 : index
    %c0_4 = arith.constant 0 : index
    %3 = vector.load %arg7[%c0_3, %c0_4] : memref<1x768xf32, #tpu.memory_space<vmem>>, vector<1x768xf32>
    tpu.vector_store %arg7[%c0_3, %c0_4], %2 {strides = array<i32>} : memref<1x768xf32, #tpu.memory_space<vmem>>, vector<1x768xf32>,
    %cst_5 = arith.constant 0.000000e+00 : f32
    %4 = vector.broadcast %cst_5 : f32 to vector<1x768xf32>
    %c0_6 = arith.constant 0 : index
    %c0_7 = arith.constant 0 : index
    %5 = vector.load %arg8[%c0_6, %c0_7] : memref<1x768xf32, #tpu.memory_space<vmem>>, vector<1x768xf32>
    tpu.vector_store %arg8[%c0_6, %c0_7], %4 {strides = array<i32>} : memref<1x768xf32, #tpu.memory_space<vmem>>, vector<1x768xf32>,
    %cst_8 = arith.constant 0.000000e+00 : f32
    %6 = vector.broadcast %cst_8 : f32 to vector<1x128xf32>
    %c0_9 = arith.constant 0 : index
    %c0_10 = arith.constant 0 : index
    %7 = vector.load %arg6[%c0_9, %c0_10] : memref<1x128xf32, #tpu.memory_space<vmem>>, vector<1x128xf32>
    tpu.vector_store %arg6[%c0_9, %c0_10], %6 {strides = array<i32>} : memref<1x128xf32, #tpu.memory_space<vmem>>, vector<1x128xf32>,
    %c0_11 = arith.constant 0 : index
    %c0_12 = arith.constant 0 : index
    %8 = vector.load %arg3[%c0_11, %c0_12] : memref<1x128xf32, #tpu.memory_space<vmem>>, vector<1x128xf32>
    %c0_13 = arith.constant 0 : index
    %c0_14 = arith.constant 0 : index
    %9 = memref.load %arg1[%c0_13, %c0_14] : memref<1x1xf32, #tpu.memory_space<smem>>
    %10 = tpu.iota {dimensions = array<i32: 1>} : vector<1x128xi32>
    %c0_i32 = arith.constant 0 : i32
    %c20_i32 = arith.constant 20 : i32
    %11 = arith.addi %c0_i32, %c20_i32 : i32
    %c1_i32 = arith.constant 1 : i32
    scf.for %arg9 = %c0_i32 to %11 step %c1_i32  : i32 {
      %c0_16 = arith.constant 0 : index
      %c0_17 = arith.constant 0 : index
      %12 = vector.load %arg5[%c0_16, %c0_17] : memref<1x768xf32, #tpu.memory_space<vmem>>, vector<1x768xf32>
      %13 = arith.truncf %12 : vector<1x768xf32> to vector<1x768xbf16>
      %c0_18 = arith.constant 0 : index
      %c0_19 = arith.constant 0 : index
      %14 = vector.load %arg4[%c0_18, %c0_19] : memref<768x128xbf16, #tpu.memory_space<vmem>>, vector<768x128xbf16>
      %cst_20 = arith.constant dense<0.000000e+00> : vector<1x128xf32>
      %15 = tpu.matmul %13, %14, %cst_20 {dimension_numbers = #tpu.dot_dimension_numbers<[1], [0], [0], [1], [0, 0, 1, 1], [], []>} : vector<1x768xbf16>, vector<768x128xbf16>, vector<1x128xf32> -> vector<1x128xf32>
      %16 = arith.mulf %15, %15 : vector<1x128xf32>
      %cst_21 = arith.constant dense<0.000000e+00> : vector<1xf32>
      %17 = vector.multi_reduction <add>, %16, %cst_21 [1] : vector<1x128xf32> to vector<1xf32>
      %18 = vector.shape_cast %17 : vector<1xf32> to vector<1x1xf32>
      %19 = math.sqrt %18 : vector<1x1xf32>
      %20 = vector.broadcast %9 : f32 to vector<1x1xf32>
      %21 = arith.mulf %19, %20 : vector<1x1xf32>
      %cst_22 = arith.constant 9.99999993E-9 : f32
      %22 = vector.broadcast %cst_22 : f32 to vector<1x1xf32>
      %23 = arith.maximumf %21, %22 : vector<1x1xf32>
      %cst_23 = arith.constant 1.000000e+00 : f32
      %24 = vector.broadcast %cst_23 : f32 to vector<1x1xf32>
      %25 = arith.divf %24, %23 : vector<1x1xf32>
      %26 = arith.mulf %15, %8 : vector<1x128xf32>
      %cst_24 = arith.constant dense<0.000000e+00> : vector<1xf32>
      %27 = vector.multi_reduction <add>, %26, %cst_24 [1] : vector<1x128xf32> to vector<1xf32>
      %28 = vector.shape_cast %27 : vector<1xf32> to vector<1x1xf32>
      %29 = arith.mulf %28, %25 : vector<1x1xf32>
      %30 = vector.broadcast %arg9 : i32 to vector<1x128xi32>
      %31 = arith.cmpi eq, %10, %30 : vector<1x128xi32>
      %cst_25 = arith.constant 0.000000e+00 : f32
      %32 = vector.broadcast %cst_25 : f32 to vector<1x1xf32>
      %33 = arith.subf %32, %29 : vector<1x1xf32>
      %c0_26 = arith.constant 0 : index
      %c0_27 = arith.constant 0 : index
      %34 = vector.load %arg6[%c0_26, %c0_27] : memref<1x128xf32, #tpu.memory_space<vmem>>, vector<1x128xf32>
      %35 = vector.shape_cast %33 : vector<1x1xf32> to vector<1x1xf32>
      %36 = vector.broadcast %35 : vector<1x1xf32> to vector<1x128xf32>
      %37 = arith.select %31, %36, %34 : vector<1x128xi1>, vector<1x128xf32>
      %c0_28 = arith.constant 0 : index
      %c0_29 = arith.constant 0 : index
      %38 = vector.load %arg6[%c0_28, %c0_29] : memref<1x128xf32, #tpu.memory_space<vmem>>, vector<1x128xf32>
      tpu.vector_store %arg6[%c0_28, %c0_29], %37 {strides = array<i32>} : memref<1x128xf32, #tpu.memory_space<vmem>>, vector<1x128xf32>,
      %cst_30 = arith.constant 9.99999993E-9 : f32
      %39 = vector.broadcast %cst_30 : f32 to vector<1x1xf32>
      %40 = arith.maximumf %18, %39 : vector<1x1xf32>
      %cst_31 = arith.constant 1.000000e+00 : f32
      %41 = vector.broadcast %cst_31 : f32 to vector<1x1xf32>
      %42 = arith.divf %41, %40 : vector<1x1xf32>
      %43 = vector.broadcast %25 : vector<1x1xf32> to vector<1x128xf32>
      %44 = arith.mulf %8, %43 : vector<1x128xf32>
      %45 = vector.broadcast %29 : vector<1x1xf32> to vector<1x128xf32>
      %46 = arith.mulf %45, %15 : vector<1x128xf32>
      %47 = vector.broadcast %42 : vector<1x1xf32> to vector<1x128xf32>
      %48 = arith.mulf %46, %47 : vector<1x128xf32>
      %49 = arith.subf %44, %48 : vector<1x128xf32>
      %cst_32 = arith.constant 0.000000e+00 : f32
      %50 = vector.broadcast %cst_32 : f32 to vector<1x128xf32>
      %51 = arith.subf %50, %49 : vector<1x128xf32>
      %52 = arith.truncf %51 : vector<1x128xf32> to vector<1x128xbf16>
      %c0_33 = arith.constant 0 : index
      %c0_34 = arith.constant 0 : index
      %53 = vector.load %arg4[%c0_33, %c0_34] : memref<768x128xbf16, #tpu.memory_space<vmem>>, vector<768x128xbf16>
      %cst_35 = arith.constant dense<0.000000e+00> : vector<1x768xf32>
      %54 = tpu.matmul %52, %53, %cst_35 {dimension_numbers = #tpu.dot_dimension_numbers<[1], [1], [0], [0], [0, 0, 1, 0], [], []>} : vector<1x128xbf16>, vector<768x128xbf16>, vector<1x768xf32> -> vector<1x768xf32>
      %c0_36 = arith.constant 0 : index
      %55 = arith.index_cast %arg9 : i32 to index
      %56 = memref.load %arg0[%c0_36, %55] : memref<2x20xf32, #tpu.memory_space<smem>>
      %c1 = arith.constant 1 : index
      %57 = arith.index_cast %arg9 : i32 to index
      %58 = memref.load %arg0[%c1, %57] : memref<2x20xf32, #tpu.memory_space<smem>>
      %c0_37 = arith.constant 0 : index
      %c0_38 = arith.constant 0 : index
      %59 = vector.load %arg7[%c0_37, %c0_38] : memref<1x768xf32, #tpu.memory_space<vmem>>, vector<1x768xf32>
      %cst_39 = arith.constant 0.899999976 : f32
      %60 = vector.broadcast %cst_39 : f32 to vector<1x768xf32>
      %61 = arith.mulf %60, %59 : vector<1x768xf32>
      %cst_40 = arith.constant 1.000000e-01 : f32
      %62 = vector.broadcast %cst_40 : f32 to vector<1x768xf32>
      %63 = arith.mulf %62, %54 : vector<1x768xf32>
      %64 = arith.addf %61, %63 : vector<1x768xf32>
      %c0_41 = arith.constant 0 : index
      %c0_42 = arith.constant 0 : index
      %65 = vector.load %arg8[%c0_41, %c0_42] : memref<1x768xf32, #tpu.memory_space<vmem>>, vector<1x768xf32>
      %cst_43 = arith.constant 9.990000e-01 : f32
      %66 = vector.broadcast %cst_43 : f32 to vector<1x768xf32>
      %67 = arith.mulf %66, %65 : vector<1x768xf32>
      %68 = arith.mulf %54, %54 : vector<1x768xf32>
      %cst_44 = arith.constant 1.000000e-03 : f32
      %69 = vector.broadcast %cst_44 : f32 to vector<1x768xf32>
      %70 = arith.mulf %69, %68 : vector<1x768xf32>
      %71 = arith.addf %67, %70 : vector<1x768xf32>
      %72 = vector.broadcast %58 : f32 to vector<1x768xf32>
      %73 = arith.mulf %71, %72 : vector<1x768xf32>
      %74 = math.sqrt %73 : vector<1x768xf32>
      %cst_45 = arith.constant 9.99999993E-9 : f32
      %75 = vector.broadcast %cst_45 : f32 to vector<1x768xf32>
      %76 = arith.addf %74, %75 : vector<1x768xf32>
      %77 = vector.broadcast %56 : f32 to vector<1x768xf32>
      %78 = arith.mulf %77, %64 : vector<1x768xf32>
      %79 = tpu.reciprocal %76 {approx = true} : vector<1x768xf32> -> vector<1x768xf32>
      %80 = arith.mulf %78, %79 : vector<1x768xf32>
      %81 = arith.subf %12, %80 : vector<1x768xf32>
      %cst_46 = arith.constant 0.000000e+00 : f32
      %cst_47 = arith.constant 1.000000e+00 : f32
      %82 = vector.broadcast %cst_46 : f32 to vector<1x768xf32>
      %83 = arith.maximumf %82, %81 : vector<1x768xf32>
      %84 = vector.broadcast %cst_47 : f32 to vector<1x768xf32>
      %85 = arith.minimumf %84, %83 : vector<1x768xf32>
      %c0_48 = arith.constant 0 : index
      %c0_49 = arith.constant 0 : index
      %86 = vector.load %arg5[%c0_48, %c0_49] : memref<1x768xf32, #tpu.memory_space<vmem>>, vector<1x768xf32>
      tpu.vector_store %arg5[%c0_48, %c0_49], %85 {strides = array<i32>} : memref<1x768xf32, #tpu.memory_space<vmem>>, vector<1x768xf32>,
      %c0_50 = arith.constant 0 : index
      %c0_51 = arith.constant 0 : index
      %87 = vector.load %arg7[%c0_50, %c0_51] : memref<1x768xf32, #tpu.memory_space<vmem>>, vector<1x768xf32>
      tpu.vector_store %arg7[%c0_50, %c0_51], %64 {strides = array<i32>} : memref<1x768xf32, #tpu.memory_space<vmem>>, vector<1x768xf32>,
      %c0_52 = arith.constant 0 : index
      %c0_53 = arith.constant 0 : index
      %88 = vector.load %arg8[%c0_52, %c0_53] : memref<1x768xf32, #tpu.memory_space<vmem>>, vector<1x768xf32>
      tpu.vector_store %arg8[%c0_52, %c0_53], %71 {strides = array<i32>} : memref<1x768xf32, #tpu.memory_space<vmem>>, vector<1x768xf32>,
    }
    %c20_i32_15 = arith.constant 20 : i32
    return
  }
}

</mosaic_0001>

<bundles_post_ra>
// kernel: _clip_optimize.1
= control target key start
LH: loop header
LB: loop body
LE: loop exit
PB: predicated region body
PF: predicated region fallthrough
CT: control target
= control target key end

     0   :  { %13 = vsyncpa [#allocation8], 0  ;;  %s1932_s0 = inlined_call_operand.vmem [shape: f32[2,20], index: 0, kind: input, shape index: {}]   ;;  %s1933_s1 = inlined_call_operand.<no memory space> [shape: f32[1,1], index: 1, kind: input, shape index: {}]   ;;  %s1934_s2 = inlined_call_operand.hbm [shape: f32[1,768], index: 2, kind: input, shape index: {}, may-alias: {2,5}]   ;;  %s1935_s3 = inlined_call_operand.vmem [shape: f32[1,128], index: 3, kind: input, shape index: {}]   ;;  %s1936_s4 = inlined_call_operand.hbm [shape: bf16[768,128], index: 4, kind: input, shape index: {}]   ;;  %s1937_s5 = inlined_call_operand.hbm [shape: f32[1,768], index: 5, kind: output, shape index: {0}, may-alias: {2,5}]   ;;  %s1938_s6 = inlined_call_operand.hbm [shape: f32[1,128], index: 6, kind: output, shape index: {1}]  }
   0x1   :  { %14 = vsyncpa [#allocation6], 0 }
   0x2   :  { %15 = vsyncpa [#allocation11], 0 }
   0x3   :  { %16 = vsyncpa [#allocation7], 0 }
   0x4   :  { %17 = vsyncpa [#allocation14], 0  ;;  %s24_s23 = sshll.u32 %s1932_s0, 4  ;;  %s25_s23 = int_to_ptr.vmem [resolvable:$true] %s24_s23 }
   0x5   :  { %s1695_s24 = scalar_lea.vmem %s25_s23, 32  ;;  %p1700_p1 = scmp.lt.s32.totalorder %s25_s23, %s25_s23 }
   0x6   :  { %p1696_p0 = scmp.ne.s32.totalorder %s25_s23, %s1695_s24  ;;  %p1701_p2 = scmp.lt.s32.totalorder %s1695_s24, %s1695_s24 }
   0x8   :  { %p1702_p3 = por %p1701_p2, %p1700_p1 }
   0xa   :  { %p1703_p4 = pnand %p1702_p3, %p1696_p0 }
   0xc   :  { %1706 = shalt.err (!%p1703_p4)
}
   0xd   :  { %s1805_s25 = smov [#allocation5]   ;;  %s1806_s26 = smov [#allocation9]  }
   0xe   :  { %27 = dma.vmem_to_smem %s25_s23, 32, %s1805_s25, [#allocation8]  }
   0xf   :  { %s36_s27 = sshll.u32 %s1806_s26, 4  ;;  %s1807_s28 = smov [#allocation10]   ;;  %s37_s27 = int_to_ptr.vmem [resolvable:$true] %s36_s27 }
  0x10   :  { %s47_s29 = sshll.u32 %s1807_s28, 4  ;;  %s1715_s30 = scalar_lea.vmem %s37_s27, 96  ;;  %s48_s29 = int_to_ptr.vmem [resolvable:$true] %s47_s29 }
  0x11   :  { %p1716_p5 = scmp.ne.s32.totalorder %s37_s27, %s1715_s30  ;;  %p1720_p6 = scmp.lt.s32.totalorder %s37_s27, %s37_s27 }
  0x12   :  { %p1721_p7 = scmp.lt.s32.totalorder %s1715_s30, %s1715_s30 }
  0x14   :  { %p1722_p8 = por %p1721_p7, %p1720_p6 }
  0x16   :  { %p1723_p9 = pnand %p1722_p8, %p1716_p5 }
  0x18   :  { %1726 = shalt.err (!%p1723_p9)
}
  0x19   :  { %39 = dma.hbm_to_vmem [thread:$0]  %s1934_s2, 96, %s37_s27, [#allocation6]  }
  0x1a   :  { %s1735_s8 = scalar_lea.vmem %s48_s29, 6144  ;;  %p1740_p11 = scmp.lt.s32.totalorder %s48_s29, %s48_s29 }
  0x1b   :  { %p1736_p10 = scmp.ne.s32.totalorder %s48_s29, %s1735_s8  ;;  %p1741_p12 = scmp.lt.s32.totalorder %s1735_s8, %s1735_s8 }
  0x1d   :  { %p1742_p13 = por %p1741_p12, %p1740_p11 }
  0x1f   :  { %p1743_p0 = pnand %p1742_p13, %p1736_p10 }
  0x21   :  { %1746 = shalt.err (!%p1743_p0)
}
  0x22   :  { %s1808_s9 = smov 64   ;;  %s1809_s10 = smov 4  }
  0x23   :  { %53 = dma.hbm_to_vmem [thread:$0]  %s1936_s4, 6144, %s48_s29, [#allocation11], %s1808_s9, %s1808_s9, %s1809_s10  }
  0x24   :  { %1791 = dma.done.wait [#allocation8], 32  }
  0x25   :  { %1792 = vsyncadd [#allocation8], 4294967264 }
  0x26   :  { %1793 = dma.done.wait [#allocation6], 96  }
  0x27   :  { %1794 = vsyncadd [#allocation6], 4294967200 }
  0x28   :  { %1795 = dma.done.wait [#allocation11], 6144  }
  0x29   :  { %1796 = vsyncadd [#allocation11], 4294961152 }
  0x2a   :  { %63 = sfence }
  0x2b   :  { %v65_v0 = vld [vmem:[#allocation9] sm:$0x3f]  ;;  %v66_v1 = vlaneseq  ;;  %v1861_v2 = vld [vmem:[%s1935_s3] sm:$0x1]  ;;  %v1810_v3 = vmov 0.0   ;;  %s1877_s3 = smov 0  }
  0x2c   :  { %73 = vst [vmem:[#allocation13] sm:$0x1] %v1810_v3 }
  0x2d   :  { %vm1864_vm0 = vcmp.lt.s32.totalorder %v66_v1, 768  ;;  %v1869_v5 = vand.u32 127, %v66_v1 }
  0x2e   :  { %70 = vst.msk [vmem:[#allocation12] sm:$0x3f] %vm1864_vm0, %v65_v0  ;;  %71 = vst.msk [vmem:[#allocation2] sm:$0x3f] %vm1864_vm0, %v1810_v3 }
  0x2f   :  { %72 = vst.msk [vmem:[#allocation3] sm:$0x3f] %vm1864_vm0, %v1810_v3 }
  0x30 LB: > { %v1589_v6 = vld [vmem:[#allocation10 + $0x78] sm:$0xff]   ;;  %v1593_v10 = vld [vmem:[#allocation10 + $0x70] sm:$0xff]   ;;  %v1597_v14 = vld [vmem:[#allocation10 + $0x68] sm:$0xff]   ;;  %v1883_v29 = vshrl.u32 %v66_v1, 7  ;;  %vm627_vm1 = vcmask 1040384   ;;  %s1171_s15 = sshra.s32 %s1803_s3, 7  ;;  %s1803_s3 = sphi %s1877_s3, %s83_s3  }
  0x31   : > { %v1590_v7 = vld [vmem:[#allocation10 + $0xf8] sm:$0xff]   ;;  %1452 = vmatprep.subr.bf16.mxu0 %v1589_v6  ;;  %v1594_v11 = vld [vmem:[#allocation10 + $0xf0] sm:$0xff]   ;;  %v1598_v15 = vld [vmem:[#allocation10 + $0xe8] sm:$0xff]   ;;  %s1450_s16 = sshll.u32 %s1171_s15, 7  ;;  %s1176_s17 = sand.u32 127, %s1803_s3 }
  0x32   : > { %v1591_v8 = vld [vmem:[#allocation10 + $0x38] sm:$0xff]   ;;  %1474 = vmatprep.subr.bf16.mxu1 %v1590_v7  ;;  %v1595_v12 = vld [vmem:[#allocation10 + $0x30] sm:$0xff]   ;;  %v1599_v16 = vld [vmem:[#allocation10 + $0x28] sm:$0xff]   ;;  %v92_v34 = vsub.s32 1, %v1883_v29  ;;  %v100_v36 = vsub.s32 3, %v1883_v29  ;;  %v88_v38 = vsub.s32 0, %v1883_v29 }
  0x33   : > { %v1592_v9 = vld [vmem:[#allocation10 + $0xb8] sm:$0xff]   ;;  %1453 = vmatpush3.bf16.msra.mxu0 %v1591_v8  ;;  %v1596_v13 = vld [vmem:[#allocation10 + $0xb0] sm:$0xff]   ;;  %v1600_v17 = vld [vmem:[#allocation10 + $0xa8] sm:$0xff]   ;;  %v96_v40 = vsub.s32 2, %v1883_v29  ;;  %v108_v42 = vsub.s32 5, %v1883_v29  ;;  %v104_v0 = vsub.s32 4, %v1883_v29 }
  0x34   : > { %1475 = vmatpush3.bf16.msra.mxu1 %v1592_v9  ;;  %1454 = vmatprep.subr.bf16.mxu0 %v1593_v10  ;;  %v1601_v18 = vld [vmem:[#allocation10 + $0x60] sm:$0xff]   ;;  %v1605_v22 = vld [vmem:[#allocation10 + $0x58] sm:$0xff]   ;;  %v1609_v26 = vld [vmem:[#allocation10 + $0x50] sm:$0xff]   ;;  %s1451_s18 = sadd.s32 128, %s1450_s16  ;;  %s1170_s21 = sld [smem:[#allocation5 + %s1803_s3]] }
  0x35   : > { %1476 = vmatprep.subr.bf16.mxu1 %v1594_v11  ;;  %v1602_v19 = vld [vmem:[#allocation10 + $0xe0] sm:$0xff]   ;;  %v1606_v23 = vld [vmem:[#allocation10 + $0xd8] sm:$0xff]   ;;  %v1610_v27 = vld [vmem:[#allocation10 + $0xd0] sm:$0xff]   ;;  %s1177_s19 = sadd.s32 %s1451_s18, %s1176_s17 }
  0x36   : > { %v1603_v20 = vld [vmem:[#allocation10 + $0x20] sm:$0xff]   ;;  %v1607_v24 = vld [vmem:[#allocation10 + $0x18] sm:$0xff]   ;;  %v1611_v28 = vld [vmem:[#allocation10 + $0x10] sm:$0xff]   ;;  %s1178_s20 = sld [smem:[#allocation5 + %s1177_s19]] }
  0x37   : > { %1455 = vmatpush3.bf16.msra.mxu0 %v1595_v12  ;;  %v1604_v21 = vld [vmem:[#allocation10 + $0xa0] sm:$0xff]   ;;  %v1608_v25 = vld [vmem:[#allocation10 + $0x98] sm:$0xff]   ;;  %v1612_v30 = vld [vmem:[#allocation10 + $0x90] sm:$0xff]  }
  0x38   : > { %1477 = vmatpush3.bf16.msra.mxu1 %v1596_v13  ;;  %1456 = vmatprep.subr.bf16.mxu0 %v1597_v14  ;;  %v1613_v31 = vld [vmem:[#allocation10 + $0x48] sm:$0xff]   ;;  %v1617_v37 = vld [vmem:[#allocation10 + $0x40] sm:$0xff]   ;;  %v1621_v48 = vld [vmem:[#allocation10 + $0x178] sm:$0xff]  }
  0x39   : > { %1478 = vmatprep.subr.bf16.mxu1 %v1598_v15  ;;  %v1614_v32 = vld [vmem:[#allocation10 + $0xc8] sm:$0xff]   ;;  %v1618_v39 = vld [vmem:[#allocation10 + $0xc0] sm:$0xff]   ;;  %v1622_v54 = vld [vmem:[#allocation10 + $0x138] sm:$0xff]  }
  0x3a   : > { %v1615_v33 = vld [vmem:[#allocation10 + $0x8] sm:$0xff]   ;;  %v1619_v41 = vld [vmem:[#allocation10] sm:$0xff]   ;;  %v1623_v56 = vld [vmem:[#allocation10 + $0x170] sm:$0xff]  }
  0x3b   : > { %1457 = vmatpush3.bf16.msra.mxu0 %v1599_v16  ;;  %v1616_v35 = vld [vmem:[#allocation10 + $0x88] sm:$0xff]   ;;  %v1620_v43 = vld [vmem:[#allocation10 + $0x80] sm:$0xff]   ;;  %v1624_v58 = vld [vmem:[#allocation10 + $0x130] sm:$0xff]  }
  0x3c   : > { %1479 = vmatpush3.bf16.msra.mxu1 %v1600_v17  ;;  %1458 = vmatprep.subr.bf16.mxu0 %v1601_v18  ;;  %v1890_v44 = vld [vmem:[#allocation12] sm:$0x3f]  ;;  %v1625_v59 = vld [vmem:[#allocation10 + $0x168] sm:$0xff]   ;;  %v1629_v63 = vld [vmem:[#allocation10 + $0x158] sm:$0xff]  }
  0x3d   : > { %1480 = vmatprep.subr.bf16.mxu1 %v1602_v19  ;;  %v93_v45 = vrot.slane %v1890_v44, %v92_v34  ;;  %v101_v46 = vrot.slane %v1890_v44, %v100_v36  ;;  %v89_v47 = vrot.slane %v1890_v44, %v88_v38  ;;  %v97_v49 = vrot.slane %v1890_v44, %v96_v40  ;;  %v1626_v60 = vld [vmem:[#allocation10 + $0x128] sm:$0xff]   ;;  %v1627_v61 = vld [vmem:[#allocation10 + $0x160] sm:$0xff]   ;;  %v1630_v3 = vld [vmem:[#allocation10 + $0x118] sm:$0xff]  }
  0x3e   : > { %v109_v50 = vrot.slane %v1890_v44, %v108_v42  ;;  %v1628_v62 = vld [vmem:[#allocation10 + $0x120] sm:$0xff]   ;;  %v1631_v6 = vld [vmem:[#allocation10 + $0x150] sm:$0xff]   ;;  %v1633_v8 = vld [vmem:[#allocation10 + $0x148] sm:$0xff]   ;;  %v105_v12 = vrot.slane %v1890_v44, %v104_v0 }
  0x3f   : > { %1459 = vmatpush3.bf16.msra.mxu0 %v1603_v20  ;;  %v117_v51 = vpack.c.bf16 %v93_v45, %v93_v45  ;;  %v119_v52 = vpack.c.bf16 %v101_v46, %v101_v46  ;;  %v116_v53 = vpack.c.bf16 %v89_v47, %v89_v47  ;;  %v118_v55 = vpack.c.bf16 %v97_v49, %v97_v49  ;;  %v1632_v7 = vld [vmem:[#allocation10 + $0x110] sm:$0xff]   ;;  %v1634_v9 = vld [vmem:[#allocation10 + $0x108] sm:$0xff]   ;;  %v1635_v10 = vld [vmem:[#allocation10 + $0x140] sm:$0xff]  }
  0x40   : > { %1481 = vmatpush3.bf16.msra.mxu1 %v1604_v21  ;;  %1460 = vmatprep.subr.bf16.mxu0 %v1605_v22  ;;  %v121_v57 = vpack.c.bf16 %v109_v50, %v109_v50  ;;  %v1636_v11 = vld [vmem:[#allocation10 + $0x100] sm:$0xff]   ;;  %v120_v13 = vpack.c.bf16 %v105_v12, %v105_v12  ;;  %v1637_v14 = vld [vmem:[#allocation10 + $0x78] sm:$0xff]   ;;  %v1641_v18 = vld [vmem:[#allocation10 + $0x70] sm:$0xff]  }
  0x41   : > { %1482 = vmatprep.subr.bf16.mxu1 %v1606_v23  ;;  %538 = vmatprep.mubr.bf16.mxu0 %v117_v51  ;;  %v1638_v15 = vld [vmem:[#allocation10 + $0x38] sm:$0xff]   ;;  %v1643_v19 = vld [vmem:[#allocation10 + $0xf0] sm:$0xff]   ;;  %v1645_v45 = vld [vmem:[#allocation10 + $0x68] sm:$0xff]  }
  0x42   : > { %578 = vmatprep.mubr.bf16.mxu1 %v119_v52  ;;  %v1639_v16 = vld [vmem:[#allocation10 + $0xf8] sm:$0xff]   ;;  %v1642_v20 = vld [vmem:[#allocation10 + $0x30] sm:$0xff]   ;;  %v1646_v46 = vld [vmem:[#allocation10 + $0x28] sm:$0xff]  }
  0x43   : > { %1461 = vmatpush3.bf16.msra.mxu0 %v1607_v24  ;;  %v1640_v17 = vld [vmem:[#allocation10 + $0xb8] sm:$0xff]   ;;  %v1644_v21 = vld [vmem:[#allocation10 + $0xb0] sm:$0xff]   ;;  %v1647_v47 = vld [vmem:[#allocation10 + $0xe8] sm:$0xff]  }
  0x44   : > { %1483 = vmatpush3.bf16.msra.mxu1 %v1608_v25  ;;  %1462 = vmatprep.subr.bf16.mxu0 %v1609_v26  ;;  %v1649_v49 = vld [vmem:[#allocation10 + $0x60] sm:$0xff]   ;;  %v1664_v0 = vld [vmem:[#allocation10 + $0x88] sm:$0xff]  }
  0x45   : > { %1484 = vmatprep.subr.bf16.mxu1 %v1610_v27  ;;  %v1650_v50 = vld [vmem:[#allocation10 + $0x20] sm:$0xff]  }
  0x46   : > { %v1651_v51 = vld [vmem:[#allocation10 + $0xe0] sm:$0xff]  }
  0x47   : > { %1463 = vmatpush3.bf16.msra.mxu0 %v1611_v28  ;;  %v1652_v52 = vld [vmem:[#allocation10 + $0xa0] sm:$0xff]  }
  0x48   : > { %1485 = vmatpush3.bf16.msra.mxu1 %v1612_v30  ;;  %1464 = vmatprep.subr.bf16.mxu0 %v1613_v31 }
  0x49   : > { %1486 = vmatprep.subr.bf16.mxu1 %v1614_v32 }
  0x4b   : > { %1465 = vmatpush3.bf16.msra.mxu0 %v1615_v33 }
  0x4c   : > { %1487 = vmatpush3.bf16.msra.mxu1 %v1616_v35  ;;  %1466 = vmatprep.subr.bf16.mxu0 %v1617_v37 }
  0x4d   : > { %1488 = vmatprep.subr.bf16.mxu1 %v1618_v39 }
  0x4f   : > { %1467 = vmatpush3.bf16.msra.mxu0 %v1619_v41 }
  0x50   : > { %1489 = vmatpush3.bf16.msra.mxu1 %v1620_v43  ;;  %1496 = vmatprep.subr.bf16.mxu0 %v1621_v48  ;;  %v1648_v48 = vld [vmem:[#allocation10 + $0xa8] sm:$0xff]  }
  0x51   : > { %1518 = vmatprep.subr.bf16.mxu1 %v1637_v14  ;;  %v638_v14 = vstv %s1933_s1 }
  0x52   : > { %539 = vmatmul.mubr.bf16.vlgmr.msra.gmra.mxu0 %v116_v53  ;;  %v1653_v53 = vld [vmem:[#allocation10 + $0x58] sm:$0xff]  }
  0x53   : > { %579 = vmatmul.mubr.bf16.vlgmr.msra.gmra.mxu1 %v118_v55  ;;  %1497 = vmatpush3.bf16.msra.mxu0 %v1622_v54  ;;  %v1654_v54 = vld [vmem:[#allocation10 + $0x18] sm:$0xff]  }
  0x54   : > { %618 = vmatprep.mubr.bf16.mxu0 %v121_v57  ;;  %1498 = vmatprep.subr.bf16.mxu0 %v1623_v56  ;;  %v1655_v55 = vld [vmem:[#allocation10 + $0xd8] sm:$0xff]   ;;  %v1657_v57 = vld [vmem:[#allocation10 + $0x50] sm:$0xff]  }
  0x55   : > { %1519 = vmatpush3.bf16.xpose.msra.mxu1 %v1638_v15  ;;  %v1656_v56 = vld [vmem:[#allocation10 + $0x98] sm:$0xff]  }
  0x56   : > { %1520 = vmatprep.subr.bf16.mxu1 %v1641_v18 }
  0x57   : > { %1499 = vmatpush3.bf16.msra.mxu0 %v1624_v58  ;;  %v1658_v58 = vld [vmem:[#allocation10 + $0x10] sm:$0xff]  }
  0x58   : > { %1500 = vmatprep.subr.bf16.mxu0 %v1625_v59  ;;  %v1659_v59 = vld [vmem:[#allocation10 + $0xd0] sm:$0xff]  }
  0x5b   : > { %1501 = vmatpush3.bf16.msra.mxu0 %v1626_v60  ;;  %v1660_v60 = vld [vmem:[#allocation10 + $0x90] sm:$0xff]  }
  0x5c   : > { %1502 = vmatprep.subr.bf16.mxu0 %v1627_v61  ;;  %v1661_v61 = vld [vmem:[#allocation10 + $0x48] sm:$0xff]  }
  0x5d   : > { %1521 = vmatpush3.bf16.xpose.msra.mxu1 %v1642_v20  ;;  %v648_v20 = vstv %s1803_s3  ;;  %s83_s3 = sadd.s32 1, %s1803_s3  }
  0x5e   : > { %1522 = vmatprep.subr.bf16.mxu1 %v1645_v45  ;;  %vm649_vm4 = vcmp.eq.s32.totalorder %v1869_v5, %v648_v20  ;;  %v1679_v45 = vld [vmem:[#allocation10 + $0x150] sm:$0xff]   ;;  %p80_p1 = scmp.ge.s32.totalorder %s83_s3, 20  }
  0x5f   : > { %1503 = vmatpush3.bf16.msra.mxu0 %v1628_v62  ;;  %v1662_v62 = vld [vmem:[#allocation10 + $0x8] sm:$0xff]   ;;  %s1812_s22 = smov (%p80_p1), [#allocation12]   ;;  %s1813_s24 = smov (%p80_p1), [#allocation13]  }
  0x60   : > { %1504 = vmatprep.subr.bf16.mxu0 %v1629_v63  ;;  %v1663_v63 = vld [vmem:[#allocation10 + $0xc8] sm:$0xff]   ;;  %s1323_s23 = sshll.u32 (%p80_p1), %s1812_s22, 4  ;;  %s1333_s25 = sshll.u32 (%p80_p1), %s1813_s24, 4  ;;  %s1324_s23 = int_to_ptr.vmem [resolvable:$true] %s1323_s23  ;;  %s1334_s25 = int_to_ptr.vmem [resolvable:$true] %s1333_s25 }
  0x61   :  { %s1747_s26 = scalar_lea.vmem (%p80_p1), %s1324_s23, 96  ;;  %p1752_p3 = scmp.lt.s32.totalorder (%p80_p1), %s1324_s23, %s1324_s23 }
  0x62   :  { %p1748_p2 = scmp.ne.s32.totalorder (%p80_p1), %s1324_s23, %s1747_s26  ;;  %p1753_p4 = scmp.lt.s32.totalorder (%p80_p1), %s1747_s26, %s1747_s26 }
  0x63   : > { %1505 = vmatpush3.bf16.msra.mxu0 %v1630_v3  ;;  %v1665_v3 = vld [vmem:[#allocation10 + $0x40] sm:$0xff]  }
  0x64   : > { %1506 = vmatprep.subr.bf16.mxu0 %v1631_v6  ;;  %v1666_v6 = vld [vmem:[#allocation10] sm:$0xff]   ;;  %p1754_p5 = por (%p80_p1), %p1753_p4, %p1752_p3 }
  0x65   : > { %1523 = vmatpush3.bf16.xpose.msra.mxu1 %v1646_v46  ;;  %v1680_v46 = vld [vmem:[#allocation10 + $0x110] sm:$0xff]  }
  0x66   : > { %1524 = vmatprep.subr.bf16.mxu1 %v1649_v49  ;;  %v1683_v49 = vld [vmem:[#allocation10 + $0x140] sm:$0xff]   ;;  %p1755_p6 = pnand (%p80_p1), %p1754_p5, %p1748_p2 }
  0x67   : > { %1507 = vmatpush3.bf16.msra.mxu0 %v1632_v7  ;;  %v1667_v7 = vld [vmem:[#allocation10 + $0xc0] sm:$0xff]  }
  0x68   : > { %1508 = vmatprep.subr.bf16.mxu0 %v1633_v8  ;;  %v1668_v8 = vld [vmem:[#allocation10 + $0x80] sm:$0xff]  }
  0x6b   : > { %1509 = vmatpush3.bf16.msra.mxu0 %v1634_v9  ;;  %v1669_v9 = vld [vmem:[#allocation10 + $0x178] sm:$0xff]  }
  0x6c   : > { %1510 = vmatprep.subr.bf16.mxu0 %v1635_v10 }
  0x6d   : > { %1525 = vmatpush3.bf16.xpose.msra.mxu1 %v1650_v50  ;;  %v1684_v50 = vld [vmem:[#allocation10 + $0x100] sm:$0xff]  }
  0x6e   : > { %1526 = vmatprep.subr.bf16.mxu1 %v1653_v53 }
  0x6f   : > { %1511 = vmatpush3.bf16.msra.mxu0 %v1636_v11 }
  0x70   : > { %1536 = vmatprep.subr.bf16.mxu0 %v1639_v16 }
  0x72   : > { %619 = vmatmul.mubr.bf16.vlgmr.msra.gmra.mxu0 %v120_v13 }
  0x73   : > { %1537 = vmatpush3.bf16.xpose.msra.mxu0 %v1640_v17 }
  0x74   : > { %1538 = vmatprep.subr.bf16.mxu0 %v1643_v19 }
  0x75   : > { %1527 = vmatpush3.bf16.xpose.msra.mxu1 %v1654_v54 }
  0x76   : > { %1528 = vmatprep.subr.bf16.mxu1 %v1657_v57 }
  0x7b   : > { %1539 = vmatpush3.bf16.xpose.msra.mxu0 %v1644_v21 }
  0x7c   : > { %1540 = vmatprep.subr.bf16.mxu0 %v1647_v47  ;;  %v1681_v47 = vld [vmem:[#allocation10 + $0x148] sm:$0xff]  }
  0x7d   : > { %1529 = vmatpush3.bf16.xpose.msra.mxu1 %v1658_v58 }
  0x7e   : > { %1530 = vmatprep.subr.bf16.mxu1 %v1661_v61 }
  0x83   : > { %1541 = vmatpush3.bf16.xpose.msra.mxu0 %v1648_v48  ;;  %v1682_v48 = vld [vmem:[#allocation10 + $0x108] sm:$0xff]  }
  0x84   : > { %1542 = vmatprep.subr.bf16.mxu0 %v1651_v51  ;;  %v1811_v51 = vmov 1966171168  }
  0x85   : > { %1531 = vmatpush3.bf16.xpose.msra.mxu1 %v1662_v62 }
  0x86   : > { %1532 = vmatprep.subr.bf16.mxu1 %v1665_v3 }
  0x8b   : > { %1543 = vmatpush3.bf16.xpose.msra.mxu0 %v1652_v52  ;;  %v1197_v52 = vunpack.c.l.s4 %v1811_v51  ;;  %v1297_v51 = vstv %s1178_s20 }
  0x8c   : > { %1544 = vmatprep.subr.bf16.mxu0 %v1655_v55 }
  0x8d   : > { %1533 = vmatpush3.bf16.xpose.msra.mxu1 %v1666_v6  ;;  %v1198_v53 = vunpack.c.0.s8 %v1197_v52 }
  0x8e   : > { %1554 = vmatprep.subr.bf16.mxu1 %v1669_v9 }
  0x93   : > { %1545 = vmatpush3.bf16.xpose.msra.mxu0 %v1656_v56 }
  0x94   : > { %1546 = vmatprep.subr.bf16.mxu0 %v1659_v59 }
  0x9b   : > { %1547 = vmatpush3.bf16.xpose.msra.mxu0 %v1660_v60  ;;  %v1201_v60 = vsub.s32 %v1198_v53, %v1883_v29 }
  0x9c   : > { %1548 = vmatprep.subr.bf16.mxu0 %v1663_v63 }
  0xa3   : > { %1549 = vmatpush3.bf16.xpose.msra.mxu0 %v1664_v0 }
  0xa4   : > { %1550 = vmatprep.subr.bf16.mxu0 %v1667_v7 }
  0xab   : > { %1551 = vmatpush3.bf16.xpose.msra.mxu0 %v1668_v8 }
 0x112   : > { %v1468_v22 = vpop.f32.mrf.mxu0 }
 0x113   : > { %v1490_v23 = vpop.f32.mrf.mxu1 }
 0x114   : > { %v1469_v24 = vpop.f32.mrf.mxu0 }
 0x115   : > { %v1491_v25 = vpop.f32.mrf.mxu1  ;;  %v1470_v31 = vadd.f32 %v1469_v24, %v1468_v22  ;;  %v651_v24 = vld [vmem:[#allocation13] sm:$0x1] }
 0x116   : > { %v1471_v26 = vpop.f32.mrf.mxu0  ;;  %v1492_v32 = vadd.f32 %v1491_v25, %v1490_v23 }
 0x117   : > { %v1493_v27 = vpop.f32.mrf.mxu1 }
 0x118   : > { %v1472_v28 = vpop.f32.mrf.mxu0  ;;  %v581_v35 = vadd.f32 %v1492_v32, %v1470_v31 }
 0x119   : > { %v1494_v30 = vpop.f32.mrf.mxu1 }
 0x132   : > { %v1512_v33 = vpop.f32.mrf.mxu0 }
 0x134   : > { %v1513_v34 = vpop.f32.mrf.mxu0 }
 0x135   : > { %v1514_v36 = vadd.f32 %v1513_v34, %v1512_v33 }
 0x136   : > { %v1515_v37 = vpop.f32.mrf.mxu0 }
 0x137   : > { %v1899_v38 = vadd.f32 %v1514_v36, %v581_v35  ;;  %v1670_v35 = vld [vmem:[#allocation10 + $0x138] sm:$0xff]   ;;  %v1671_v36 = vld [vmem:[#allocation10 + $0x170] sm:$0xff]  }
 0x138   : > { %v1516_v39 = vpop.f32.mrf.mxu0  ;;  %v1672_v37 = vld [vmem:[#allocation10 + $0x130] sm:$0xff]  }
 0x139   : > { %v626_v40 = vmul.f32 %v1899_v38, %v1899_v38  ;;  %v643_v42 = vmul.f32 %v1899_v38, %v1861_v2  ;;  %v1674_v39 = vld [vmem:[#allocation10 + $0x128] sm:$0xff]  }
 0x13b   : > { %v628_v41 = vsel %vm627_vm1, %v626_v40, 0.0  ;;  %v644_v43 = vsel %vm627_vm1, %v643_v42, 0.0  ;;  %v1675_v40 = vld [vmem:[#allocation10 + $0x160] sm:$0xff]   ;;  %v1677_v42 = vld [vmem:[#allocation10 + $0x158] sm:$0xff]  }
 0x13c   : > { %629 = vadd.xlane.f32.xlu0 %v628_v41  ;;  %v1676_v41 = vld [vmem:[#allocation10 + $0x120] sm:$0xff]  }
 0x140   : > { %645 = vadd.xlane.f32.xlu0 %v644_v43  ;;  %v1678_v43 = vld [vmem:[#allocation10 + $0x118] sm:$0xff]  }
 0x1c5   : > { %v630_v10 = vpop.xlane.xlu0 %629 }
 0x1c6   : > { %1685 = vrsqrt.f32 %v630_v10  ;;  %vm633_vm2 = vcmp.eq.f32.partialorder %v630_v10, inf  ;;  %v636_v13 = vand.u32 2147483648, %v630_v10  ;;  %vm635_vm3 = vcmp.eq.f32.partialorder %v630_v10, 0.0 }
 0x1c7   : > { %v654_v19 = vmax.f32 %v630_v10, 1e-08 }
 0x1c9   : > { %v646_v22 = vpop.xlane.xlu0 %645 }
 0x1d3   : > { %v1686_v11 = vpop.eup %1685 }
 0x1d4   : > { %v632_v12 = vmul.f32 %v1686_v11, %v630_v10 }
 0x1d6   : > { %v634_v15 = vsel %vm633_vm2, %v630_v10, %v632_v12 }
 0x1d7   : > { %v637_v16 = vsel %vm635_vm3, %v636_v13, %v634_v15 }
 0x1d8   : > { %v639_v17 = vmul.f32 %v638_v14, %v637_v16 }
 0x1da   : > { %v640_v18 = vmax.f32 %v639_v17, 1e-08 }
 0x1dc   : > { %1687 = vrcp.f32 %v640_v18 }
 0x1dd   : > { %1689 = vrcp.f32 %v654_v19 }
 0x1e9   : > { %v1688_v21 = vpop.eup %1687 }
 0x1ea   : > { %v647_v23 = vmul.f32 %v1688_v21, %v646_v22  ;;  %v1690_v27 = vpop.eup %1689  ;;  %v657_v28 = vmul.f32 %v1688_v21, %v1861_v2 }
 0x1ec   : > { %v650_v25 = vsub.f32 0.0, %v647_v23  ;;  %v658_v26 = vmul.f32 %v647_v23, %v1899_v38  ;;  %v1673_v38 = vld [vmem:[#allocation10 + $0x168] sm:$0xff]  }
 0x1ee   : > { %v652_v30 = vsel %vm649_vm4, %v650_v25, %v651_v24  ;;  %v659_v31 = vmul.f32 %v1690_v27, %v658_v26 }
 0x1ef   : > { %653 = vst [vmem:[#allocation13] sm:$0x1] %v652_v30 }
 0x1f0   : > { %v660_v32 = vsub.f32 %v657_v28, %v659_v31 }
 0x1f2   : > { %v661_v33 = vsub.f32 0.0, %v660_v32 }
 0x1f4   : > { %v662_v34 = vpack.c.bf16 %v661_v33, %v661_v33 }
 0x1f6   : > { %1534 = vmatprep.mubr.bf16.mxu1 %v662_v34  ;;  %1552 = vmatprep.mubr.bf16.mxu0 %v662_v34 }
 0x1f7   : > { %1535 = vmatmul.mubr.bf16.vlgmr.msra.gmra.mxu1 %v662_v34  ;;  %1553 = vmatmul.mubr.bf16.vlgmr.msra.gmra.mxu0 %v662_v34 }
 0x1f8   : > { %1555 = vmatpush3.bf16.xpose.msra.mxu1 %v1670_v35  ;;  %1570 = vmatprep.mubr.bf16.mxu1 %v662_v34 }
 0x1f9   : > { %1556 = vmatprep.subr.bf16.mxu1 %v1671_v36 }
 0x200   : > { %1557 = vmatpush3.bf16.xpose.msra.mxu1 %v1672_v37  ;;  %v1179_v37 = vld [vmem:[#allocation2] sm:$0x3f] }
 0x201   : > { %1558 = vmatprep.subr.bf16.mxu1 %v1673_v38 }
 0x208   : > { %1559 = vmatpush3.bf16.xpose.msra.mxu1 %v1674_v39 }
 0x209   : > { %1560 = vmatprep.subr.bf16.mxu1 %v1675_v40 }
 0x210   : > { %1561 = vmatpush3.bf16.xpose.msra.mxu1 %v1676_v41  ;;  %v1235_v41 = vld [vmem:[#allocation3] sm:$0x3f] }
 0x211   : > { %1562 = vmatprep.subr.bf16.mxu1 %v1677_v42  ;;  %v1180_v42 = vmul.f32 0.9, %v1179_v37 }
 0x218   : > { %1563 = vmatpush3.bf16.xpose.msra.mxu1 %v1678_v43 }
 0x219   : > { %1564 = vmatprep.subr.bf16.mxu1 %v1679_v45 }
 0x220   : > { %1565 = vmatpush3.bf16.xpose.msra.mxu1 %v1680_v46 }
 0x221   : > { %1566 = vmatprep.subr.bf16.mxu1 %v1681_v47  ;;  %v1236_v47 = vmul.f32 0.999, %v1235_v41 }
 0x228   : > { %1567 = vmatpush3.bf16.xpose.msra.mxu1 %v1682_v48 }
 0x229   : > { %1568 = vmatprep.subr.bf16.mxu1 %v1683_v49 }
 0x230   : > { %1569 = vmatpush3.bf16.xpose.msra.mxu1 %v1684_v50 }
 0x237   : > { %1571 = vmatmul.mubr.bf16.vlgmr.msra.gmra.mxu1 %v662_v34 }
 0x2b7   : > { %v1081_v54 = vpop.f32.mrf.mxu1  ;;  %v1122_v55 = vpop.f32.mrf.mxu0 }
 0x2b8   : > { %v1237_v56 = vmul.f32 %v1081_v54, %v1081_v54  ;;  %v1239_v57 = vmul.f32 %v1122_v55, %v1122_v55  ;;  %v1181_v61 = vmul.f32 0.1, %v1081_v54  ;;  %v1183_v0 = vmul.f32 0.1, %v1122_v55 }
 0x2b9   : > { %v1083_v58 = vpop.f32.mrf.mxu1  ;;  %v1124_v59 = vpop.f32.mrf.mxu0 }
 0x2ba   : > { %v1182_v62 = vmul.f32 0.1, %v1083_v58  ;;  %v1238_v63 = vmul.f32 %v1083_v58, %v1083_v58  ;;  %v1184_v3 = vmul.f32 0.1, %v1124_v59  ;;  %v1240_v6 = vmul.f32 %v1124_v59, %v1124_v59 }
 0x2bb   : > { %v1085_v7 = vpop.f32.mrf.mxu1  ;;  %v1126_v8 = vpop.f32.mrf.mxu0  ;;  %v1243_v9 = vmul.f32 0.001, %v1237_v56  ;;  %v1245_v12 = vmul.f32 0.001, %v1239_v57 }
 0x2bc   : > { %v1193_v10 = vcombine.low %v1181_v61, %v1182_v62  ;;  %v1244_v11 = vmul.f32 0.001, %v1238_v63  ;;  %v1194_v13 = vcombine.low %v1183_v0, %v1184_v3  ;;  %v1246_v14 = vmul.f32 0.001, %v1240_v6 }
 0x2bd   : > { %v1086_v15 = vpop.f32.mrf.mxu1  ;;  %v1127_v16 = vpop.f32.mrf.mxu0 }
 0x2be   : > { %v1202_v17 = vrot.slane %v1193_v10, %v1201_v60  ;;  %v1255_v29 = vcombine.low %v1243_v9, %v1244_v11  ;;  %v1209_v18 = vrot.slane %v1194_v13, %v1201_v60  ;;  %v1256_v19 = vcombine.low %v1245_v12, %v1246_v14 }
 0x2c0   : > { %v1264_v20 = vrot.slane %v1255_v29, %v1201_v60  ;;  %v1217_v21 = vcombine.low %v1202_v17, %v1209_v18  ;;  %v1271_v22 = vrot.slane %v1256_v19, %v1201_v60 }
 0x2c2   : > { %v1224_v23 = vrot.slane %v1217_v21, %v1201_v60  ;;  %v1279_v24 = vcombine.low %v1264_v20, %v1271_v22 }
 0x2c4   : > { %v1286_v25 = vrot.slane %v1279_v24, %v1201_v60 }
 0x2f7   : > { %v1163_v26 = vpop.f32.mrf.mxu1 }
 0x2f8   : > { %v1241_v27 = vmul.f32 %v1163_v26, %v1163_v26  ;;  %v1185_v30 = vmul.f32 0.1, %v1163_v26 }
 0x2f9   : > { %v1165_v28 = vpop.f32.mrf.mxu1 }
 0x2fa   : > { %v1186_v31 = vmul.f32 0.1, %v1165_v28  ;;  %v1242_v32 = vmul.f32 %v1165_v28, %v1165_v28  ;;  %v1247_v34 = vmul.f32 0.001, %v1241_v27 }
 0x2fb   : > { %v1167_v33 = vpop.f32.mrf.mxu1 }
 0x2fc   : > { %v1195_v35 = vcombine.low %v1185_v30, %v1186_v31  ;;  %v1248_v36 = vmul.f32 0.001, %v1242_v32 }
 0x2fd   : > { %v1168_v38 = vpop.f32.mrf.mxu1 }
 0x2fe   : > { %v1216_v39 = vrot.slane %v1195_v35, %v1201_v60  ;;  %v1257_v40 = vcombine.low %v1247_v34, %v1248_v36 }
 0x300   : > { %v1231_v43 = vrot.slane %v1216_v39, %v1201_v60  ;;  %v1278_v45 = vrot.slane %v1257_v40, %v1201_v60 }
 0x302   : > { %v1232_v46 = vcombine.low %v1224_v23, %v1231_v43  ;;  %v1293_v48 = vrot.slane %v1278_v45, %v1201_v60  ;;  %v1307_v60 = vstv %s1170_s21 }
 0x304   : > { %v1234_v49 = vadd.f32 %v1232_v46, %v1180_v42  ;;  %v1294_v50 = vcombine.low %v1286_v25, %v1293_v48 }
 0x306   : > { %v1296_v52 = vadd.f32 %v1294_v50, %v1236_v47  ;;  %1315 = vst.msk [vmem:[#allocation2] sm:$0x3f] %vm1864_vm0, %v1234_v49  ;;  %v1308_v61 = vmul.f32 %v1307_v60, %v1234_v49 }
 0x308   : > { %v1298_v53 = vmul.f32 %v1297_v51, %v1296_v52  ;;  %1316 = vst.msk [vmem:[#allocation3] sm:$0x3f] %vm1864_vm0, %v1296_v52 }
 0x30a   : > { %1691 = vrsqrt.f32 %v1298_v53  ;;  %vm1301_vm5 = vcmp.eq.f32.partialorder %v1298_v53, inf  ;;  %v1304_v56 = vand.u32 2147483648, %v1298_v53  ;;  %vm1303_vm6 = vcmp.eq.f32.partialorder %v1298_v53, 0.0 }
 0x317   : > { %v1692_v54 = vpop.eup %1691 }
 0x318   : > { %v1300_v55 = vmul.f32 %v1692_v54, %v1298_v53 }
 0x31a   : > { %v1302_v57 = vsel %vm1301_vm5, %v1298_v53, %v1300_v55 }
 0x31b   : > { %v1305_v58 = vsel %vm1303_vm6, %v1304_v56, %v1302_v57 }
 0x31c   : > { %v1306_v59 = vadd.f32 1e-08, %v1305_v58 }
 0x31e   : > { %1693 = vrcp.f32 %v1306_v59 }
 0x32b   : > { %v1694_v62 = vpop.eup %1693 }
 0x32c   : > { %v1310_v63 = vmul.f32 %v1694_v62, %v1308_v61 }
 0x32e   : > { %v1311_v0 = vsub.f32 %v1890_v44, %v1310_v63 }
 0x330   : > { %v1312_v3 = vmax.f32 %v1311_v0, 0.0  ;;  %82 = sbr.rel (!%p80_p1) target bundleno = 48 (0x30), region = 67 }
 0x332   : > { %v1313_v6 = vmin.f32 %v1312_v3, 1.0 }
 0x334   : > { %1314 = vst.msk [vmem:[#allocation12] sm:$0x3f] %vm1864_vm0, %v1313_v6 }
 0x335   :  { %1758 = shalt.err (!%p1755_p6)
}
 0x336   :  { %1326 = dma.vmem_to_hbm [thread:$0]  %s1324_s23, 96, %s1937_s5, [#allocation7]  }
 0x337   :  { %s1767_s29 = scalar_lea.vmem %s1334_s25, 16  ;;  %s1771_s30 = scalar_lea.vmem %s1334_s25, 32 }
 0x338   :  { %p1768_p7 = scmp.ne.s32.totalorder %s1334_s25, %s1767_s29  ;;  %p1772_p8 = scmp.lt.s32.totalorder %s1334_s25, %s1334_s25 }
 0x339   :  { %p1773_p9 = scmp.lt.s32.totalorder %s1771_s30, %s1767_s29 }
 0x33b   :  { %p1774_p10 = por %p1773_p9, %p1772_p8 }
 0x33d   :  { %p1775_p11 = pnand %p1774_p10, %p1768_p7 }
 0x33f   :  { %1778 = shalt.err (!%p1775_p11)
}
 0x340   :  { %1336 = dma.vmem_to_hbm [thread:$0]  %s1334_s25, 16, %s1938_s6, [#allocation14]  }
 0x341   :  { %1797 = dma.done.wait [#allocation7], 96  }
 0x342   :  { %1798 = vsyncadd [#allocation7], 4294967200 }
 0x343   :  { %1799 = dma.done.wait [#allocation14], 16  }
 0x344   :  { %1800 = vsyncadd [#allocation14], 4294967280 }
 0x345   :  { %1343 = vsyncpa [#allocation6], 1 }
 0x346   :  { %1344 = vsyncpa [#allocation11], 1 }
 0x347   :  { %1345 = vsyncpa [#allocation7], 1 }
 0x348   :  { %1346 = vsyncpa [#allocation14], 1 }
 0x349   :  { %1347 = vsyncpa [#allocation8], 1 }

</bundles_post_ra>
